<compile_context>
chip_gen: v7x
topology: tpu7x:2x2x1
jax: 0.10.0
libtpu: 0.0.40
codegen_flags: <defaults>
</compile_context>

<pallas_src>
import jax
import jax.numpy as jnp
import numpy as np
from jax.experimental import pallas as pl
from jax.experimental.pallas import tpu as pltpu


def _make_fire_kernel(img_w):
    """Kernel body factory, closing over the image width (for tap shifts)."""
    # Tap order t = 3*ky + kx, matching the fused expand-weight column blocks.
    tap_shifts = [(ky - 1) * img_w + (kx - 1)
                  for ky in range(3) for kx in range(3)]

    def fire_kernel(x_ref, wsq_ref, bsq_ref, wbig_ref, bcat_ref, out_ref):
        # x_ref   : (Nb, Cin, HW)      out_ref : (Nb, Cout, HW)
        # wsq_ref : (sq, Cin)          bsq_ref : (sq, 1)    f32
        # wbig_ref: (Cout, 9*sq)       bcat_ref: (Cout, 1)  f32
        nb, _, hw = x_ref.shape
        total = nb * hw
        cdt = wbig_ref.dtype  # MXU operand dtype (f32 or bf16)

        # ---- fold the per-step batch into the lane axis: (Cin, nb*HW).
        # HW is a multiple of 128 so every piece is lane-tile aligned: the
        # concat is cheap vreg placement and avoids any HBM transpose of x.
        if nb == 1:
            x = x_ref[0]
        else:
            x = jnp.concatenate([x_ref[n] for n in range(nb)], axis=1)
        x = x.astype(cdt)                                          # (Cin, nb*HW)

        # ---- squeeze 1x1 conv + ReLU: ONE matmul for the whole block ----
        s = jnp.dot(wsq_ref[...], x, preferred_element_type=jnp.float32)
        s = jnp.maximum(s + bsq_ref[...], 0.0)                     # (sq, nb*HW)
        s = s.astype(cdt)

        # ---- im2col via lane rolls on the folded axis.  Tap (ky,kx) needs
        # s[:, p + d], d = (ky-1)*W + (kx-1).  Wrap-around / cross-image reads
        # only contaminate border pixels, which are cropped afterwards. ----
        taps = [s if d == 0 else pltpu.roll(s, (-d) % total, axis=1)
                for d in tap_shifts]
        patches = jnp.concatenate(taps, axis=0)                    # (9*sq, nb*HW)

        # ---- fused expand1x1 + expand3x3 matmul; rows already ordered
        # [e1 | e3], so no result concat is needed ----
        y = jnp.dot(wbig_ref[...], patches,
                    preferred_element_type=jnp.float32)            # (Cout, nb*HW)
        y = jnp.maximum(y + bcat_ref[...], 0.0).astype(out_ref.dtype)

        # ---- scatter back to N-major output: 128-aligned lane slices, every
        # store is fully lane-dense and unmasked ----
        for n in range(nb):
            out_ref[n] = y[:, n * hw:(n + 1) * hw]

    return fire_kernel


def _num_tensorcores():
    """2 on v7x (2 TCs/chip), otherwise 1.  Perf hint only; never correctness."""
    try:
        kind = jax.devices()[0].device_kind.lower()
    except Exception:
        return 1
    return 2 if ("v7" in kind or "7x" in kind) else 1


def _pick_block_n(N, Cin, Cout, sq, HW, num_tc):
    """Images per grid step: as large as the VMEM budget allows (amortize the
    ~0.35us/step pipeline overhead); keep >= num_tc grid steps only when the
    chip actually has 2 TensorCores to shard the 'parallel' batch axis."""
    # Per-image f32 working set: double-buffered x/out pipeline blocks plus the
    # in-kernel values (folded x, s, patches, y + cast copy).
    per_img = (2 * (Cin + Cout) + (Cin + 10 * sq + 2 * Cout)) * HW * 4
    budget = 16 * 1024 * 1024          # fits v5e/v6e scoped VMEM and v7x's 64 MiB
    bn = max(1, min(N, budget // max(per_img, 1)))
    bn = min(bn, 32)                   # keep the static concat/store unrolls short
    if num_tc > 1 and N > 1:
        bn = min(bn, pl.cdiv(N, num_tc))   # >= 2 grid steps on 2-TC chips
    return max(1, bn)


def fire_pallas(x, w_sq, b_sq, w_e1, b_e1, w_e3, b_e3, *,
                block_n=None, param_dtype=jnp.float32, out_dtype=None,
                crop=True):
    """Fire forward.

    x    : (N, Cin, H, W) float32 (NCHW, PyTorch layout)
    w_sq : (sq, Cin, 1, 1), b_sq: (sq,)      -- PyTorch Conv2d weight layout
    w_e1 : (e1, sq, 1, 1),  b_e1: (e1,)
    w_e3 : (e3, sq, 3, 3),  b_e3: (e3,)
    Returns (N, e1+e3, H-2, W-2) (or the full (N, e1+e3, H, W) map if
    crop=False, so a consumer can fuse the valid-region crop itself).
    """
    N, Cin, H, W = x.shape
    sq = w_sq.shape[0]
    e1 = w_e1.shape[0]
    e3 = w_e3.shape[0]
    Cout = e1 + e3
    HW = H * W
    out_dtype = x.dtype if out_dtype is None else out_dtype

    if block_n is None:
        block_n = _pick_block_n(N, Cin, Cout, sq, HW, _num_tensorcores())
    block_n = max(1, min(block_n, N))

    grid = pl.cdiv(N, block_n)
    Npad = grid * block_n

    # ---- host-side weight prep (tiny, done once in XLA) ----
    w_sqT = w_sq[:, :, 0, 0].astype(param_dtype)                  # (sq, Cin)
    b_sq_c = b_sq.reshape(sq, 1).astype(jnp.float32)

    # Fused expand weight: column block t = 3*ky+kx covers tap (ky, kx); the
    # e1 rows are nonzero only at the center tap, so the result rows come out
    # already in concatenated [e1 | e3] channel order.
    blocks = []
    for ky in range(3):
        for kx in range(3):
            top = (w_e1[:, :, 0, 0] if (ky == 1 and kx == 1)
                   else jnp.zeros((e1, sq), w_e1.dtype))
            bot = w_e3[:, :, ky, kx]
            blocks.append(jnp.concatenate([top, bot], axis=0))    # (Cout, sq)
    w_big = jnp.concatenate(blocks, axis=1).astype(param_dtype)   # (Cout, 9*sq)
    b_cat = jnp.concatenate([b_e1, b_e3]).reshape(Cout, 1).astype(jnp.float32)

    # Free, contiguous reshape — no HBM transpose anywhere in the wrapper.
    x3 = x.reshape(N, Cin, HW)
    if Npad != N:
        # cdiv + zero-padded tail keeps block_n large for awkward N; padded
        # images are computed and dropped below.
        x3 = jnp.pad(x3, ((0, Npad - N), (0, 0), (0, 0)))

    flops = 2 * N * HW * sq * (Cin + 9 * Cout)
    bytes_accessed = int(
        Npad * Cin * HW * x.dtype.itemsize
        + Npad * Cout * HW * jnp.dtype(out_dtype).itemsize
        + w_sqT.size * jnp.dtype(param_dtype).itemsize
        + w_big.size * jnp.dtype(param_dtype).itemsize
        + (sq + Cout) * 4)

    out_full = pl.pallas_call(
        _make_fire_kernel(W),
        out_shape=jax.ShapeDtypeStruct((Npad, Cout, HW), out_dtype),
        grid_spec=pl.GridSpec(
            grid=(grid,),
            in_specs=[
                pl.BlockSpec((block_n, Cin, HW), lambda i: (i, 0, 0)),
                pl.BlockSpec((sq, Cin), lambda i: (0, 0)),
                pl.BlockSpec((sq, 1), lambda i: (0, 0)),
                pl.BlockSpec((Cout, 9 * sq), lambda i: (0, 0)),
                pl.BlockSpec((Cout, 1), lambda i: (0, 0)),
            ],
            out_specs=pl.BlockSpec((block_n, Cout, HW), lambda i: (i, 0, 0)),
        ),
        compiler_params=pltpu.CompilerParams(
            dimension_semantics=("parallel",),
            vmem_limit_bytes=32 * 1024 * 1024),
        cost_estimate=pl.CostEstimate(
            flops=flops, transcendentals=0, bytes_accessed=bytes_accessed),
    )(x3, w_sqT, b_sq_c, w_big, b_cat)

    out = out_full[:N].reshape(N, Cout, H, W)
    if crop:
        # Valid-region crop (matches the PyTorch output shape).  This is one
        # extra HBM pass over the output when it is not fused into a consumer;
        # call with crop=False to hand the full map downstream instead.
        out = out[:, :, 1:-1, 1:-1]
    return out


def fire_ref(x, w_sq, b_sq, w_e1, b_e1, w_e3, b_e3):
    """Pure-JAX reference matching the PyTorch module (f32, NCHW)."""
    s = jnp.einsum('nchw,oc->nohw', x, w_sq[:, :, 0, 0]) \
        + b_sq[None, :, None, None]
    s = jnp.maximum(s, 0.0)
    y1 = jnp.einsum('nchw,oc->nohw', s[:, :, 1:-1, 1:-1], w_e1[:, :, 0, 0])
    y1 = jnp.maximum(y1 + b_e1[None, :, None, None], 0.0)
    N, _, H, W = s.shape
    Ho, Wo = H - 2, W - 2
    e3 = w_e3.shape[0]
    acc = jnp.zeros((N, e3, Ho, Wo), jnp.float32) + b_e3[None, :, None, None]
    for ky in range(3):
        for kx in range(3):
            acc = acc + jnp.einsum('nchw,oc->nohw',
                                   s[:, :, ky:ky + Ho, kx:kx + Wo],
                                   w_e3[:, :, ky, kx])
    y3 = jnp.maximum(acc, 0.0)
    return jnp.concatenate([y1, y3], axis=1)


if __name__ == "__main__":
    # Fire(inplanes=4, squeeze_planes=8, expand1x1_planes=16, expand3x3_planes=16)
    N, Cin, H, W = 2, 4, 16, 16
    sq, e1, e3 = 8, 16, 16

    key = jax.random.PRNGKey(0)
    k = jax.random.split(key, 7)

    x = jax.random.normal(k[0], (N, Cin, H, W), dtype=jnp.float32)
    # PyTorch Conv2d parameter layout: weight (Cout, Cin, kh, kw), bias (Cout,)
    w_sq = jax.random.normal(k[1], (sq, Cin, 1, 1), dtype=jnp.float32) * 0.2
    b_sq = jax.random.normal(k[2], (sq,), dtype=jnp.float32) * 0.1
    w_e1 = jax.random.normal(k[3], (e1, sq, 1, 1), dtype=jnp.float32) * 0.2
    b_e1 = jax.random.normal(k[4], (e1,), dtype=jnp.float32) * 0.1
    w_e3 = jax.random.normal(k[5], (e3, sq, 3, 3), dtype=jnp.float32) * 0.2
    b_e3 = jax.random.normal(k[6], (e3,), dtype=jnp.float32) * 0.1

    # jit the wrapper so the weight prep and the valid-region crop each become
    # a single fused XLA pass around the pallas_call.
    fire = jax.jit(fire_pallas)
    out = fire(x, w_sq, b_sq, w_e1, b_e1, w_e3, b_e3)
    out = jax.block_until_ready(out)

    ref = fire_ref(x, w_sq, b_sq, w_e1, b_e1, w_e3, b_e3)
    assert out.shape == (N, e1 + e3, H - 2, W - 2), out.shape
    np.testing.assert_allclose(np.asarray(out), np.asarray(ref),
                               rtol=1e-4, atol=1e-4)

    print("KERNEL_OK")
</pallas_src>

<mosaic_0001>
module attributes {stable_mosaic.version = 11 : i64} {
  func.func @fire_kernel(%arg0: i32, %arg1: memref<2x4x256xf32, #tpu.memory_space<vmem>>, %arg2: memref<8x4xf32, #tpu.memory_space<vmem>>, %arg3: memref<8x1xf32, #tpu.memory_space<vmem>>, %arg4: memref<32x72xf32, #tpu.memory_space<vmem>>, %arg5: memref<32x1xf32, #tpu.memory_space<vmem>>, %arg6: memref<2x32x256xf32, #tpu.memory_space<vmem>>) attributes {dimension_semantics = [#tpu.dimension_semantics<parallel>], iteration_bounds = array<i64: 1>, scalar_prefetch = 0 : i64, scratch_operands = 0 : i64, tpu.core_type = #tpu.core_type<tc>, window_params = [{transform_indices = @transform_0, window_bounds = array<i64: 2, 4, 256>}, {pipeline_mode = #tpu.pipeline_mode<synchronous>, transform_indices = @transform_1, window_bounds = array<i64: 8, 4>}, {pipeline_mode = #tpu.pipeline_mode<synchronous>, transform_indices = @transform_2, window_bounds = array<i64: 8, 1>}, {pipeline_mode = #tpu.pipeline_mode<synchronous>, transform_indices = @transform_3, window_bounds = array<i64: 32, 72>}, {pipeline_mode = #tpu.pipeline_mode<synchronous>, transform_indices = @transform_4, window_bounds = array<i64: 32, 1>}, {transform_indices = @transform_5, window_bounds = array<i64: 2, 32, 256>}]} {
    %c0 = arith.constant 0 : index
    %c0_0 = arith.constant 0 : index
    %c0_1 = arith.constant 0 : index
    %0 = vector.load %arg1[%c0, %c0_0, %c0_1] : memref<2x4x256xf32, #tpu.memory_space<vmem>>, vector<1x4x256xf32>
    %1 = vector.shape_cast %0 : vector<1x4x256xf32> to vector<4x256xf32>
    %c1 = arith.constant 1 : index
    %c0_2 = arith.constant 0 : index
    %c0_3 = arith.constant 0 : index
    %2 = vector.load %arg1[%c1, %c0_2, %c0_3] : memref<2x4x256xf32, #tpu.memory_space<vmem>>, vector<1x4x256xf32>
    %3 = vector.shape_cast %2 : vector<1x4x256xf32> to vector<4x256xf32>
    %4 = tpu.concatenate %1, %3 in 1 : vector<4x256xf32>, vector<4x256xf32> -> vector<4x512xf32>
    %c0_4 = arith.constant 0 : index
    %c0_5 = arith.constant 0 : index
    %5 = vector.load %arg2[%c0_4, %c0_5] : memref<8x4xf32, #tpu.memory_space<vmem>>, vector<8x4xf32>
    %cst = arith.constant dense<0.000000e+00> : vector<8x512xf32>
    %6 = tpu.matmul %5, %4, %cst {dimension_numbers = #tpu.dot_dimension_numbers<[1], [0], [0], [1], [0, 0, 1, 1], [], []>} : vector<8x4xf32>, vector<4x512xf32>, vector<8x512xf32> -> vector<8x512xf32>
    %c0_6 = arith.constant 0 : index
    %c0_7 = arith.constant 0 : index
    %7 = vector.load %arg3[%c0_6, %c0_7] : memref<8x1xf32, #tpu.memory_space<vmem>>, vector<8x1xf32>
    %8 = vector.broadcast %7 : vector<8x1xf32> to vector<8x512xf32>
    %9 = arith.addf %6, %8 : vector<8x512xf32>
    %cst_8 = arith.constant 0.000000e+00 : f32
    %10 = vector.broadcast %cst_8 : f32 to vector<8x512xf32>
    %11 = arith.maximumf %9, %10 : vector<8x512xf32>
    %c17_i32 = arith.constant 17 : i32
    %12 = tpu.dynamic_rotate %11 by %c17_i32 dim 1 : vector<8x512xf32>, i32 -> vector<8x512xf32>
    %c16_i32 = arith.constant 16 : i32
    %13 = tpu.dynamic_rotate %11 by %c16_i32 dim 1 : vector<8x512xf32>, i32 -> vector<8x512xf32>
    %c15_i32 = arith.constant 15 : i32
    %14 = tpu.dynamic_rotate %11 by %c15_i32 dim 1 : vector<8x512xf32>, i32 -> vector<8x512xf32>
    %c1_i32 = arith.constant 1 : i32
    %15 = tpu.dynamic_rotate %11 by %c1_i32 dim 1 : vector<8x512xf32>, i32 -> vector<8x512xf32>
    %c511_i32 = arith.constant 511 : i32
    %16 = tpu.dynamic_rotate %11 by %c511_i32 dim 1 : vector<8x512xf32>, i32 -> vector<8x512xf32>
    %c497_i32 = arith.constant 497 : i32
    %17 = tpu.dynamic_rotate %11 by %c497_i32 dim 1 : vector<8x512xf32>, i32 -> vector<8x512xf32>
    %c496_i32 = arith.constant 496 : i32
    %18 = tpu.dynamic_rotate %11 by %c496_i32 dim 1 : vector<8x512xf32>, i32 -> vector<8x512xf32>
    %c495_i32 = arith.constant 495 : i32
    %19 = tpu.dynamic_rotate %11 by %c495_i32 dim 1 : vector<8x512xf32>, i32 -> vector<8x512xf32>
    %20 = tpu.concatenate %12, %13, %14, %15, %11, %16, %17, %18, %19 in 0 : vector<8x512xf32>, vector<8x512xf32>, vector<8x512xf32>, vector<8x512xf32>, vector<8x512xf32>, vector<8x512xf32>, vector<8x512xf32>, vector<8x512xf32>, vector<8x512xf32> -> vector<72x512xf32>
    %c0_9 = arith.constant 0 : index
    %c0_10 = arith.constant 0 : index
    %21 = vector.load %arg4[%c0_9, %c0_10] : memref<32x72xf32, #tpu.memory_space<vmem>>, vector<32x72xf32>
    %cst_11 = arith.constant dense<0.000000e+00> : vector<32x512xf32>
    %22 = tpu.matmul %21, %20, %cst_11 {dimension_numbers = #tpu.dot_dimension_numbers<[1], [0], [0], [1], [0, 0, 1, 1], [], []>} : vector<32x72xf32>, vector<72x512xf32>, vector<32x512xf32> -> vector<32x512xf32>
    %c0_12 = arith.constant 0 : index
    %c0_13 = arith.constant 0 : index
    %23 = vector.load %arg5[%c0_12, %c0_13] : memref<32x1xf32, #tpu.memory_space<vmem>>, vector<32x1xf32>
    %24 = vector.broadcast %23 : vector<32x1xf32> to vector<32x512xf32>
    %25 = arith.addf %22, %24 : vector<32x512xf32>
    %cst_14 = arith.constant 0.000000e+00 : f32
    %26 = vector.broadcast %cst_14 : f32 to vector<32x512xf32>
    %27 = arith.maximumf %25, %26 : vector<32x512xf32>
    %28 = vector.extract_strided_slice %27 {offsets = [0, 0], sizes = [32, 256], strides = [1, 1]} : vector<32x512xf32> to vector<32x256xf32>
    %c0_15 = arith.constant 0 : index
    %c0_16 = arith.constant 0 : index
    %c0_17 = arith.constant 0 : index
    %29 = vector.load %arg6[%c0_15, %c0_16, %c0_17] : memref<2x32x256xf32, #tpu.memory_space<vmem>>, vector<1x32x256xf32>
    %30 = vector.shape_cast %29 : vector<1x32x256xf32> to vector<32x256xf32>
    %31 = vector.shape_cast %28 : vector<32x256xf32> to vector<1x32x256xf32>
    tpu.vector_store %arg6[%c0_15, %c0_16, %c0_17], %31 {strides = array<i32>} : memref<2x32x256xf32, #tpu.memory_space<vmem>>, vector<1x32x256xf32>,
    %32 = vector.extract_strided_slice %27 {offsets = [0, 256], sizes = [32, 256], strides = [1, 1]} : vector<32x512xf32> to vector<32x256xf32>
    %c1_18 = arith.constant 1 : index
    %c0_19 = arith.constant 0 : index
    %c0_20 = arith.constant 0 : index
    %33 = vector.load %arg6[%c1_18, %c0_19, %c0_20] : memref<2x32x256xf32, #tpu.memory_space<vmem>>, vector<1x32x256xf32>
    %34 = vector.shape_cast %33 : vector<1x32x256xf32> to vector<32x256xf32>
    %35 = vector.shape_cast %32 : vector<32x256xf32> to vector<1x32x256xf32>
    tpu.vector_store %arg6[%c1_18, %c0_19, %c0_20], %35 {strides = array<i32>} : memref<2x32x256xf32, #tpu.memory_space<vmem>>, vector<1x32x256xf32>,
    return
  }
  func.func @transform_0(%arg0: i32) -> (i32, i32, i32) {
    %c0_i32 = arith.constant 0 : i32
    %c0_i32_0 = arith.constant 0 : i32
    %c0_i32_1 = arith.constant 0 : i32
    return %arg0, %c0_i32, %c0_i32_0 : i32, i32, i32
  }
  func.func @transform_1(%arg0: i32) -> (i32, i32) {
    %c0_i32 = arith.constant 0 : i32
    %c0_i32_0 = arith.constant 0 : i32
    %c0_i32_1 = arith.constant 0 : i32
    return %c0_i32, %c0_i32_0 : i32, i32
  }
  func.func @transform_2(%arg0: i32) -> (i32, i32) {
    %c0_i32 = arith.constant 0 : i32
    %c0_i32_0 = arith.constant 0 : i32
    %c0_i32_1 = arith.constant 0 : i32
    return %c0_i32, %c0_i32_0 : i32, i32
  }
  func.func @transform_3(%arg0: i32) -> (i32, i32) {
    %c0_i32 = arith.constant 0 : i32
    %c0_i32_0 = arith.constant 0 : i32
    %c0_i32_1 = arith.constant 0 : i32
    return %c0_i32, %c0_i32_0 : i32, i32
  }
  func.func @transform_4(%arg0: i32) -> (i32, i32) {
    %c0_i32 = arith.constant 0 : i32
    %c0_i32_0 = arith.constant 0 : i32
    %c0_i32_1 = arith.constant 0 : i32
    return %c0_i32, %c0_i32_0 : i32, i32
  }
  func.func @transform_5(%arg0: i32) -> (i32, i32, i32) {
    %c0_i32 = arith.constant 0 : i32
    %c0_i32_0 = arith.constant 0 : i32
    %c0_i32_1 = arith.constant 0 : i32
    return %arg0, %c0_i32, %c0_i32_0 : i32, i32, i32
  }
}

</mosaic_0001>

<bundles_post_ra>
// kernel: fire_pallas.1
= control target key start
LH: loop header
LB: loop body
LE: loop exit
PB: predicated region body
PF: predicated region fallthrough
CT: control target
= control target key end

     0   :  { %vm38_vm0 = vcmask 1043456   ;;  %v694_v2 = vmov 0.0   ;;  %v695_v5 = vmov 0   ;;  %vm34_vm1 = vcmask 31744   ;;  %s699_s26 = smov 1   ;;  %s700_s27 = smov 127   ;;  %s878_s0 = inlined_call_operand.vmem [shape: f32[2,4,256], index: 0, kind: input, shape index: {}]   ;;  %s879_s1 = inlined_call_operand.vmem [shape: f32[8,4], index: 1, kind: input, shape index: {}]   ;;  %s880_s2 = inlined_call_operand.vmem [shape: f32[8,1], index: 2, kind: input, shape index: {}]   ;;  %s881_s4 = inlined_call_operand.vmem [shape: f32[32,1], index: 4, kind: input, shape index: {}]   ;;  %s882_s3 = inlined_call_operand.vmem [shape: f32[32,72], index: 3, kind: input, shape index: {}]   ;;  %s883_s5 = inlined_call_operand.vmem [shape: f32[2,32,256], index: 5, kind: output, shape index: {}]  }
   0x1   :  { %v20_v0 = vld [vmem:[%s878_s0] sm:$0xff]  ;;  %v555_v1 = vld [vmem:[%s878_s0 + $0x8] sm:$0xff]  ;;  %111 = vmatprep.mubr.f32.mxu0 %v694_v2  ;;  %182 = vmatprep.mubr.f32.mxu1 %v694_v2  ;;  %s696_s0 = smov 17   ;;  %s701_s28 = smov 113   ;;  %v306_v24 = vld [vmem:[%s881_s4 + $0x18] sm:$0xff]  ;;  %v201_v27 = vlaneseq  ;;  %vm327_vm10 = vcmask 588800  }
   0x2   :  { %v24_v3 = vcombine.high %v20_v0, %v20_v0  ;;  %v26_v4 = vcombine.high %v555_v1, %v555_v1  ;;  %620 = vset.pattern.permute.xlu0 %v695_v5  ;;  %v28_v6 = vld [vmem:[%s880_s2] sm:$0xff]  ;;  %691 = vset.pattern.permute.xlu1 %v695_v5  ;;  %s698_s2 = smov 15   ;;  %s702_s29 = smov 112   ;;  %v304_v23 = vld [vmem:[%s881_s4 + $0x8] sm:$0xff]  ;;  %v305_v26 = vld [vmem:[%s881_s4 + $0x10] sm:$0xff] }
   0x3   :  { %v27_v7 = vld [vmem:[%s879_s1] sm:$0xff]  ;;  %31 = vperm.xlu0 %620, %v28_v6   ;;  %s697_s1 = smov 16   ;;  %s703_s30 = smov 111   ;;  %v782_v28 = vand.u32 127, %v201_v27 }
   0x4   :  { %556 = vmatprep.subr.msk.mxu0 %vm38_vm0, %v24_v3  ;;  %559 = vmatprep.subr.msk.mxu1 %vm38_vm0, %v26_v4  ;;  %v303_v25 = vld [vmem:[%s881_s4] sm:$0xff] }
   0x5   :  { %557 = vmatpush1.msk.msra.mxu0 %vm38_vm0, %v20_v0  ;;  %560 = vmatpush1.msk.msra.mxu1 %vm38_vm0, %v555_v1  ;;  %vm203_vm2 = vcmp.lt.s32.totalorder %v782_v28, 17  ;;  %vm216_vm3 = vcmp.lt.s32.totalorder %v782_v28, 16  ;;  %vm229_vm4 = vcmp.lt.s32.totalorder %v782_v28, 15  ;;  %vm242_vm5 = vcmp.lt.s32.totalorder %v782_v28, 1 }
   0x6   :  { %558 = vmatmul.mubr.msk.f32.vlgmr.msra.gmra.mrb[0].mxu0 %vm34_vm1, %v27_v7  ;;  %561 = vmatmul.mubr.msk.f32.vlgmr.msra.gmra.mrb[0].mxu1 %vm34_vm1, %v27_v7  ;;  %vm255_vm6 = vcmp.lt.s32.totalorder %v782_v28, 127  ;;  %vm268_vm7 = vcmp.lt.s32.totalorder %v782_v28, 113  ;;  %vm281_vm8 = vcmp.lt.s32.totalorder %v782_v28, 112  ;;  %vm294_vm9 = vcmp.lt.s32.totalorder %v782_v28, 111  ;;  %v300_v28 = vld [vmem:[%s882_s3 + $0x8] sm:$0xff] }
   0x7   :  { %404 = vmatprep.mubr.f32.mxu0 %v694_v2  ;;  %493 = vmatprep.mubr.f32.mxu1 %v694_v2 }
  0x82   :  { %v32_v8 = vpop.permute.xlu0 %31 }
  0xd9   :  { %v113_v9 = vpop.f32.mrb[0].mxu0  ;;  %v184_v10 = vpop.f32.mrb[0].mxu1 }
  0xda   :  { %v114_v11 = vadd.f32 %v113_v9, %v32_v8  ;;  %v185_v12 = vadd.f32 %v184_v10, %v32_v8  ;;  %v115_v13 = vpop.f32.mrb[1].mxu0  ;;  %v186_v14 = vpop.f32.mrb[1].mxu1 }
  0xdb   :  { %v116_v15 = vadd.f32 %v115_v13, %v32_v8  ;;  %v187_v16 = vadd.f32 %v186_v14, %v32_v8 }
  0xdc   :  { %v754_v17 = vmax.f32 %v114_v11, 0.0  ;;  %v756_v18 = vmax.f32 %v185_v12, 0.0 }
  0xdd   :  { %v758_v19 = vmax.f32 %v116_v15, 0.0  ;;  %v760_v20 = vmax.f32 %v187_v16, 0.0 }
  0xdf   :  { %v626_v21 = vpack.i.bf16 %v760_v20, %v756_v18  ;;  %v621_v22 = vpack.i.bf16 %v758_v19, %v754_v17 }
  0xe1   :  { %627 = vrot.lane.b32.xlu1 %v626_v21, %s696_s0  ;;  %622 = vrot.lane.b32.xlu0 %v621_v22, %s696_s0 }
  0xe5   :  { %632 = vrot.lane.b32.xlu1 %v621_v22, %s697_s1  ;;  %637 = vrot.lane.b32.xlu0 %v626_v21, %s697_s1 }
  0xe9   :  { %642 = vrot.lane.b32.xlu1 %v621_v22, %s698_s2  ;;  %647 = vrot.lane.b32.xlu0 %v626_v21, %s698_s2 }
  0xed   :  { %652 = vrot.lane.b32.xlu1 %v621_v22, %s699_s26  ;;  %657 = vrot.lane.b32.xlu0 %v626_v21, %s699_s26 }
  0xf1   :  { %662 = vrot.lane.b32.xlu1 %v621_v22, %s700_s27  ;;  %667 = vrot.lane.b32.xlu0 %v626_v21, %s700_s27 }
  0xf5   :  { %672 = vrot.lane.b32.xlu1 %v621_v22, %s701_s28  ;;  %677 = vrot.lane.b32.xlu0 %v626_v21, %s701_s28 }
  0xf9   :  { %682 = vrot.lane.b32.xlu1 %v621_v22, %s702_s29  ;;  %687 = vrot.lane.b32.xlu0 %v626_v21, %s702_s29 }
  0xfd   :  { %286 = vrot.lane.b32.xlu1 %v754_v17, %s703_s30  ;;  %288 = vrot.lane.b32.xlu0 %v758_v19, %s703_s30 }
 0x101   :  { %290 = vrot.lane.b32.xlu1 %v756_v18, %s703_s30  ;;  %292 = vrot.lane.b32.xlu0 %v760_v20, %s703_s30 }
 0x105   :  { %314 = vperm.xlu0 %620, %v304_v23   ;;  %309 = vperm.xlu1 %691, %v303_v25  }
 0x109   :  { %324 = vperm.xlu0 %620, %v306_v24   ;;  %319 = vperm.xlu1 %691, %v305_v26  }
 0x153   :  { %v628_v29 = vpop.permute.xlu1 %627  ;;  %v623_v30 = vpop.permute.xlu0 %622 }
 0x154   :  { %v630_v31 = vunpack.i.h.bf16 %v628_v29  ;;  %v629_v32 = vunpack.i.l.bf16 %v628_v29  ;;  %v625_v33 = vunpack.i.h.bf16 %v623_v30  ;;  %v624_v34 = vunpack.i.l.bf16 %v623_v30 }
 0x156   :  { %v205_v41 = vsel %vm203_vm2, %v625_v33, %v629_v32  ;;  %v207_v42 = vsel %vm203_vm2, %v630_v31, %v624_v34  ;;  %v206_v43 = vsel %vm203_vm2, %v624_v34, %v625_v33  ;;  %v204_v44 = vsel %vm203_vm2, %v629_v32, %v630_v31 }
 0x157   :  { %v633_v35 = vpop.permute.xlu1 %632  ;;  %v638_v36 = vpop.permute.xlu0 %637 }
 0x158   :  { %v635_v37 = vunpack.i.h.bf16 %v633_v35  ;;  %v634_v38 = vunpack.i.l.bf16 %v633_v35  ;;  %v640_v39 = vunpack.i.h.bf16 %v638_v36  ;;  %v639_v40 = vunpack.i.l.bf16 %v638_v36 }
 0x15a   :  { %v220_v45 = vsel %vm216_vm3, %v640_v39, %v634_v38  ;;  %v218_v46 = vsel %vm216_vm3, %v635_v37, %v639_v40  ;;  %v219_v47 = vsel %vm216_vm3, %v634_v38, %v635_v37  ;;  %v217_v48 = vsel %vm216_vm3, %v639_v40, %v640_v39 }
 0x15b   :  { %v580_v49 = vpack.c.bf16 %v220_v45, %v207_v42  ;;  %v596_v50 = vpack.c.bf16 %v218_v46, %v205_v41  ;;  %v643_v51 = vpop.permute.xlu1 %642  ;;  %v648_v52 = vpop.permute.xlu0 %647  ;;  %v578_v53 = vpack.c.bf16 %v219_v47, %v206_v43  ;;  %v594_v54 = vpack.c.bf16 %v217_v48, %v204_v44 }
 0x15c   :  { %v645_v55 = vunpack.i.h.bf16 %v643_v51  ;;  %v644_v56 = vunpack.i.l.bf16 %v643_v51  ;;  %v650_v57 = vunpack.i.h.bf16 %v648_v52  ;;  %v649_v58 = vunpack.i.l.bf16 %v648_v52 }
 0x15d   :  { %579 = vmatprep.subr.bf16.mxu0 %v578_v53  ;;  %595 = vmatprep.subr.bf16.mxu1 %v594_v54 }
 0x15e   :  { %581 = vmatpush1.bf16.msra.mxu0 %v580_v49  ;;  %597 = vmatpush1.bf16.msra.mxu1 %v596_v50  ;;  %v233_v1 = vsel %vm229_vm4, %v650_v57, %v644_v56  ;;  %v231_v3 = vsel %vm229_vm4, %v645_v55, %v649_v58  ;;  %v232_v4 = vsel %vm229_vm4, %v644_v56, %v645_v55 }
 0x15f   :  { %v653_v59 = vpop.permute.xlu1 %652  ;;  %v658_v60 = vpop.permute.xlu0 %657  ;;  %v230_v5 = vsel %vm229_vm4, %v649_v58, %v650_v57 }
 0x160   :  { %v655_v61 = vunpack.i.h.bf16 %v653_v59  ;;  %v654_v62 = vunpack.i.l.bf16 %v653_v59  ;;  %v660_v63 = vunpack.i.h.bf16 %v658_v60  ;;  %v659_v0 = vunpack.i.l.bf16 %v658_v60  ;;  %v299_v60 = vld [vmem:[%s882_s3] sm:$0xff] }
 0x162   :  { %v246_v6 = vsel %vm242_vm5, %v660_v63, %v654_v62  ;;  %v244_v7 = vsel %vm242_vm5, %v655_v61, %v659_v0  ;;  %v245_v8 = vsel %vm242_vm5, %v654_v62, %v655_v61  ;;  %v243_v9 = vsel %vm242_vm5, %v659_v0, %v660_v63  ;;  %v301_v62 = vld [vmem:[%s882_s3 + $0x10] sm:$0xff]  ;;  %v302_v63 = vld [vmem:[%s882_s3 + $0x18] sm:$0xff] }
 0x163   :  { %v584_v10 = vpack.c.bf16 %v246_v6, %v233_v1  ;;  %v600_v11 = vpack.c.bf16 %v244_v7, %v231_v3  ;;  %v663_v12 = vpop.permute.xlu1 %662  ;;  %v668_v13 = vpop.permute.xlu0 %667  ;;  %v582_v14 = vpack.c.bf16 %v245_v8, %v232_v4  ;;  %v598_v15 = vpack.c.bf16 %v243_v9, %v230_v5 }
 0x164   :  { %v665_v16 = vunpack.i.h.bf16 %v663_v12  ;;  %v664_v21 = vunpack.i.l.bf16 %v663_v12  ;;  %v670_v22 = vunpack.i.h.bf16 %v668_v13  ;;  %v669_v23 = vunpack.i.l.bf16 %v668_v13 }
 0x165   :  { %583 = vmatprep.subr.bf16.mxu0 %v582_v14  ;;  %599 = vmatprep.subr.bf16.mxu1 %v598_v15 }
 0x166   :  { %v258_v24 = vsel %vm255_vm6, %v664_v21, %v665_v16  ;;  %v256_v25 = vsel %vm255_vm6, %v669_v23, %v670_v22  ;;  %585 = vmatpush1.bf16.msra.mxu0 %v584_v10  ;;  %601 = vmatpush1.bf16.msra.mxu1 %v600_v11  ;;  %v257_v26 = vsel %vm255_vm6, %v665_v16, %v669_v23 }
 0x167   :  { %v588_v27 = vpack.c.bf16 %v258_v24, %v754_v17  ;;  %v673_v29 = vpop.permute.xlu1 %672  ;;  %v678_v30 = vpop.permute.xlu0 %677  ;;  %v586_v31 = vpack.c.bf16 %v257_v26, %v758_v19  ;;  %v259_v32 = vsel %vm255_vm6, %v670_v22, %v664_v21  ;;  %v604_v33 = vpack.c.bf16 %v256_v25, %v756_v18 }
 0x168   :  { %v675_v34 = vunpack.i.h.bf16 %v673_v29  ;;  %v674_v35 = vunpack.i.l.bf16 %v673_v29  ;;  %v680_v36 = vunpack.i.h.bf16 %v678_v30  ;;  %v679_v37 = vunpack.i.l.bf16 %v678_v30 }
 0x169   :  { %587 = vmatprep.subr.bf16.mxu0 %v586_v31  ;;  %v602_v38 = vpack.c.bf16 %v259_v32, %v760_v20 }
 0x16a   :  { %589 = vmatpush1.bf16.msra.mxu0 %v588_v27  ;;  %v271_v42 = vsel %vm268_vm7, %v674_v35, %v675_v34  ;;  %v269_v43 = vsel %vm268_vm7, %v679_v37, %v680_v36  ;;  %v270_v44 = vsel %vm268_vm7, %v675_v34, %v679_v37  ;;  %v272_v45 = vsel %vm268_vm7, %v680_v36, %v674_v35 }
 0x16b   :  { %603 = vmatprep.subr.bf16.mxu1 %v602_v38  ;;  %v683_v17 = vpop.permute.xlu1 %682  ;;  %v688_v19 = vpop.permute.xlu0 %687 }
 0x16c   :  { %605 = vmatpush1.bf16.msra.mxu1 %v604_v33  ;;  %v685_v39 = vunpack.i.h.bf16 %v683_v17  ;;  %v684_v40 = vunpack.i.l.bf16 %v683_v17  ;;  %v690_v41 = vunpack.i.h.bf16 %v688_v19  ;;  %v689_v18 = vunpack.i.l.bf16 %v688_v19 }
 0x16e   :  { %v284_v46 = vsel %vm281_vm8, %v684_v40, %v685_v39  ;;  %v282_v47 = vsel %vm281_vm8, %v689_v18, %v690_v41  ;;  %v283_v20 = vsel %vm281_vm8, %v685_v39, %v689_v18  ;;  %v285_v48 = vsel %vm281_vm8, %v690_v41, %v684_v40 }
 0x16f   :  { %v592_v49 = vpack.c.bf16 %v284_v46, %v271_v42  ;;  %v608_v50 = vpack.c.bf16 %v282_v47, %v269_v43  ;;  %v287_v51 = vpop.permute.xlu1 %286  ;;  %v289_v52 = vpop.permute.xlu0 %288  ;;  %v590_v53 = vpack.c.bf16 %v283_v20, %v270_v44  ;;  %v606_v54 = vpack.c.bf16 %v285_v48, %v272_v45 }
 0x170   :  { %v297_v61 = vsel %vm294_vm9, %v287_v51, %v289_v52 }
 0x171   :  { %591 = vmatprep.subr.bf16.mxu0 %v590_v53  ;;  %607 = vmatprep.subr.bf16.mxu1 %v606_v54 }
 0x172   :  { %593 = vmatpush1.bf16.msra.mxu0 %v592_v49  ;;  %609 = vmatpush1.bf16.msra.mxu1 %v608_v50 }
 0x173   :  { %v291_v55 = vpop.permute.xlu1 %290  ;;  %v293_v56 = vpop.permute.xlu0 %292 }
 0x174   :  { %v295_v57 = vsel %vm294_vm9, %v291_v55, %v293_v56  ;;  %v296_v58 = vsel %vm294_vm9, %v289_v52, %v291_v55  ;;  %v298_v59 = vsel %vm294_vm9, %v293_v56, %v287_v51 }
 0x175   :  { %356 = vmatprep.subr.mxu0 %v296_v58  ;;  %445 = vmatprep.subr.mxu1 %v298_v59 }
 0x176   :  { %357 = vmatpush1.msra.mxu0 %v297_v61  ;;  %446 = vmatpush1.msra.mxu1 %v295_v57 }
 0x177   :  { %562 = vmatmul.mubr.msk.f32.vlgmr.msra.gmra.mrb[2].mxu0 %vm327_vm10, %v299_v60  ;;  %566 = vmatmul.mubr.msk.f32.vlgmr.msra.gmra.mrb[2].mxu1 %vm327_vm10, %v299_v60 }
 0x178   :  { %410 = vmatprep.mubr.f32.mxu0 %v694_v2  ;;  %499 = vmatprep.mubr.f32.mxu1 %v694_v2 }
 0x17b   :  { %563 = vmatmul.mubr.msk.f32.gmra.mrb[4].mxu0 %vm327_vm10, %v300_v28  ;;  %567 = vmatmul.mubr.msk.f32.gmra.mrb[4].mxu1 %vm327_vm10, %v300_v28 }
 0x17c   :  { %416 = vmatprep.mubr.f32.mxu0 %v694_v2  ;;  %505 = vmatprep.mubr.f32.mxu1 %v694_v2 }
 0x17f   :  { %564 = vmatmul.mubr.msk.f32.gmra.mrb[6].mxu0 %vm327_vm10, %v301_v62  ;;  %568 = vmatmul.mubr.msk.f32.gmra.mrb[6].mxu1 %vm327_vm10, %v301_v62 }
 0x180   :  { %422 = vmatprep.mubr.f32.mxu0 %v694_v2  ;;  %511 = vmatprep.mubr.f32.mxu1 %v694_v2 }
 0x183   :  { %565 = vmatmul.mubr.msk.f32.gmra.mrb[8].mxu0 %vm327_vm10, %v302_v63  ;;  %569 = vmatmul.mubr.msk.f32.gmra.mrb[8].mxu1 %vm327_vm10, %v302_v63 }
 0x184   :  { %v310_v0 = vpop.permute.xlu1 %309  ;;  %v315_v10 = vpop.permute.xlu0 %314 }
 0x188   :  { %v320_v26 = vpop.permute.xlu1 %319  ;;  %v325_v19 = vpop.permute.xlu0 %324 }
 0x24a   :  { %v406_v1 = vpop.f32.mrb[2].mxu0  ;;  %v495_v3 = vpop.f32.mrb[2].mxu1 }
 0x24b   :  { %v407_v4 = vadd.f32 %v406_v1, %v310_v0  ;;  %v496_v5 = vadd.f32 %v495_v3, %v310_v0  ;;  %v408_v6 = vpop.f32.mrb[3].mxu0  ;;  %v497_v7 = vpop.f32.mrb[3].mxu1 }
 0x24c   :  { %v409_v8 = vadd.f32 %v408_v6, %v310_v0  ;;  %v498_v9 = vadd.f32 %v497_v7, %v310_v0 }
 0x24d   :  { %v518_v11 = vmax.f32 %v407_v4, 0.0  ;;  %v520_v2 = vmax.f32 %v496_v5, 0.0 }
 0x24e   :  { %v519_v12 = vmax.f32 %v409_v8, 0.0  ;;  %v521_v13 = vmax.f32 %v498_v9, 0.0  ;;  %v412_v14 = vpop.f32.mrb[4].mxu0  ;;  %v501_v15 = vpop.f32.mrb[4].mxu1 }
 0x24f   :  { %534 = vst [vmem:[%s883_s5] sm:$0xff] %v518_v11  ;;  %570 = vst [vmem:[%s883_s5 + $0x40] sm:$0xff] %v520_v2  ;;  %v413_v16 = vadd.f32 %v412_v14, %v315_v10  ;;  %v502_v21 = vadd.f32 %v501_v15, %v315_v10  ;;  %v414_v22 = vpop.f32.mrb[5].mxu0  ;;  %v503_v23 = vpop.f32.mrb[5].mxu1 }
 0x250   :  { %535 = vst [vmem:[%s883_s5 + $0x8] sm:$0xff] %v519_v12  ;;  %571 = vst [vmem:[%s883_s5 + $0x48] sm:$0xff] %v521_v13  ;;  %v415_v24 = vadd.f32 %v414_v22, %v315_v10  ;;  %v504_v25 = vadd.f32 %v503_v23, %v315_v10 }
 0x251   :  { %v522_v27 = vmax.f32 %v413_v16, 0.0  ;;  %v524_v29 = vmax.f32 %v502_v21, 0.0 }
 0x252   :  { %v523_v30 = vmax.f32 %v415_v24, 0.0  ;;  %v525_v31 = vmax.f32 %v504_v25, 0.0  ;;  %v418_v32 = vpop.f32.mrb[6].mxu0  ;;  %v507_v33 = vpop.f32.mrb[6].mxu1 }
 0x253   :  { %536 = vst [vmem:[%s883_s5 + $0x10] sm:$0xff] %v522_v27  ;;  %572 = vst [vmem:[%s883_s5 + $0x50] sm:$0xff] %v524_v29  ;;  %v419_v34 = vadd.f32 %v418_v32, %v320_v26  ;;  %v508_v35 = vadd.f32 %v507_v33, %v320_v26  ;;  %v420_v36 = vpop.f32.mrb[7].mxu0  ;;  %v509_v37 = vpop.f32.mrb[7].mxu1 }
 0x254   :  { %537 = vst [vmem:[%s883_s5 + $0x18] sm:$0xff] %v523_v30  ;;  %573 = vst [vmem:[%s883_s5 + $0x58] sm:$0xff] %v525_v31  ;;  %v421_v38 = vadd.f32 %v420_v36, %v320_v26  ;;  %v510_v17 = vadd.f32 %v509_v37, %v320_v26 }
 0x255   :  { %v526_v39 = vmax.f32 %v419_v34, 0.0  ;;  %v528_v40 = vmax.f32 %v508_v35, 0.0 }
 0x256   :  { %v527_v41 = vmax.f32 %v421_v38, 0.0  ;;  %v529_v18 = vmax.f32 %v510_v17, 0.0  ;;  %v424_v42 = vpop.f32.mrb[8].mxu0  ;;  %v513_v43 = vpop.f32.mrb[8].mxu1 }
 0x257   :  { %538 = vst [vmem:[%s883_s5 + $0x20] sm:$0xff] %v526_v39  ;;  %574 = vst [vmem:[%s883_s5 + $0x60] sm:$0xff] %v528_v40  ;;  %v425_v44 = vadd.f32 %v424_v42, %v325_v19  ;;  %v514_v45 = vadd.f32 %v513_v43, %v325_v19  ;;  %v426_v46 = vpop.f32.mrb[9].mxu0  ;;  %v515_v47 = vpop.f32.mrb[9].mxu1 }
 0x258   :  { %539 = vst [vmem:[%s883_s5 + $0x28] sm:$0xff] %v527_v41  ;;  %575 = vst [vmem:[%s883_s5 + $0x68] sm:$0xff] %v529_v18  ;;  %v427_v20 = vadd.f32 %v426_v46, %v325_v19  ;;  %v516_v48 = vadd.f32 %v515_v47, %v325_v19 }
 0x259   :  { %v530_v49 = vmax.f32 %v425_v44, 0.0  ;;  %v532_v50 = vmax.f32 %v514_v45, 0.0 }
 0x25a   :  { %v531_v51 = vmax.f32 %v427_v20, 0.0  ;;  %v533_v52 = vmax.f32 %v516_v48, 0.0 }
 0x25b   :  { %540 = vst [vmem:[%s883_s5 + $0x30] sm:$0xff] %v530_v49  ;;  %576 = vst [vmem:[%s883_s5 + $0x70] sm:$0xff] %v532_v50 }
 0x25c   :  { %541 = vst [vmem:[%s883_s5 + $0x38] sm:$0xff] %v531_v51  ;;  %577 = vst [vmem:[%s883_s5 + $0x78] sm:$0xff] %v533_v52 }

</bundles_post_ra>
